<compile_context>
chip_gen: v7x
topology: tpu7x:2x2x1
jax: 0.10.0
libtpu: 0.0.40
codegen_flags: <defaults>
</compile_context>

<pallas_src>
import functools

import jax
import jax.numpy as jnp
from jax import lax
from jax.experimental import pallas as pl
from jax.experimental.pallas import tpu as pltpu


def _round_up(x, m):
    return ((x + m - 1) // m) * m


def _cdiv(a, b):
    return (a + b - 1) // b


def _seg_head_kernel(xt_ref, w1_ref, b1_ref, w2_ref, b2_ref, out_ref, *, w_pad):
    # xt_ref : [1, 1, 3*Cin, (TH+2)*W_pad] bf16  column-tap rows incl. dy halo
    # w1_ref : [3, F, 3*Cin] bf16   per-dy 3x3-conv weights, K order (dx, cin)
    # b1_ref : [F, 1] f32
    # w2_ref : [C, F] bf16          1x1-conv weights
    # b2_ref : [C, 1] f32
    # out_ref: [1, C, TH*W_pad] bf16 (lane-dense: TH*W_pad % 128 == 0)
    t = out_ref.shape[-1]                               # TH * W_pad lanes
    # 3x3 conv = 3 accumulating MXU matmuls (one per row tap dy).  The dy shift
    # is a 128-aligned lane slice of the halo tile, so no HBM im2col is needed.
    h = jnp.dot(w1_ref[0], xt_ref[0, 0, :, pl.ds(0 * w_pad, t)],
                preferred_element_type=jnp.float32)
    h = h + jnp.dot(w1_ref[1], xt_ref[0, 0, :, pl.ds(1 * w_pad, t)],
                    preferred_element_type=jnp.float32)
    h = h + jnp.dot(w1_ref[2], xt_ref[0, 0, :, pl.ds(2 * w_pad, t)],
                    preferred_element_type=jnp.float32)
    h = jnp.maximum(h + b1_ref[...], 0.0)               # bias + ReLU in f32
    o = jnp.dot(w2_ref[...], h.astype(jnp.bfloat16),    # 1x1 conv on the MXU
                preferred_element_type=jnp.float32)
    out_ref[0] = (o + b2_ref[...]).astype(out_ref.dtype)


def _model_forward(x_nchw, w1, b1, w2, b2):
    """Synthetic segmentation model: returns a dict with key 'out' (NCHW logits)."""
    N, Cin, H, W = x_nchw.shape
    F_hidden = w1.shape[0]
    C_out = w2.shape[0]
    LANE = 128

    # ---- tile geometry ---------------------------------------------------
    W_pad = _round_up(W, LANE)            # lane-dense rows of output pixels
    TARGET_LANES = 16 * 1024              # big tiles (amortize per-step cost)
    TH = max(1, min(H, TARGET_LANES // W_pad))
    # v7x has 2 TensorCores: prefer smaller tiles over idling a core.
    while TH > 1 and N * _cdiv(H, TH) < 4:
        TH = _cdiv(TH, 2)
    nH = _cdiv(H, TH)
    H_pad = nH * TH                       # decoupled from tile: <= TH-1 dead rows

    # ---- glue (outside kernel): bf16 first, 3-column-tap expansion --------
    # Only the 3 dx taps are materialized in HBM (~3x bf16 of the input); the
    # 3 dy taps are handled in-kernel from the +2 halo rows per row-tile.
    xb = jnp.transpose(x_nchw.astype(jnp.bfloat16), (0, 2, 3, 1))   # NHWC bf16
    canvas = jnp.pad(xb, ((0, 0), (1, H_pad + 1 - H), (1, W_pad + 1 - W), (0, 0)))
    # canvas: [N, H_pad+2, W_pad+2, Cin] with zero SAME-padding halo
    cols = jnp.stack([canvas[:, :, dx:dx + W_pad, :] for dx in range(3)], axis=3)
    cols = jnp.transpose(cols, (0, 1, 3, 4, 2))        # [N, H_pad+2, 3, Cin, W_pad]
    tiles = jnp.stack([cols[:, i * TH:i * TH + TH + 2] for i in range(nH)], axis=1)
    xt = jnp.transpose(tiles, (0, 1, 3, 4, 2, 5))      # [N, nH, 3, Cin, TH+2, W_pad]
    xt = xt.reshape(N, nH, 3 * Cin, (TH + 2) * W_pad)

    # torch weight layout [F, Cin, 3, 3] -> per-dy [3, F, (dx, cin)]
    w1r = jnp.transpose(w1, (2, 0, 3, 1)).reshape(3, F_hidden, 3 * Cin)
    w1r = w1r.astype(jnp.bfloat16)
    w2r = w2.reshape(C_out, F_hidden).astype(jnp.bfloat16)
    b1c = b1.reshape(F_hidden, 1).astype(jnp.float32)
    b2c = b2.reshape(C_out, 1).astype(jnp.float32)

    out = pl.pallas_call(
        functools.partial(_seg_head_kernel, w_pad=W_pad),
        out_shape=jax.ShapeDtypeStruct((N, C_out, H_pad * W_pad), jnp.bfloat16),
        grid_spec=pltpu.PrefetchScalarGridSpec(
            num_scalar_prefetch=0,
            grid=(N, nH),
            in_specs=[
                pl.BlockSpec((1, 1, 3 * Cin, (TH + 2) * W_pad),
                             lambda n, i: (n, i, 0, 0)),
                pl.BlockSpec((3, F_hidden, 3 * Cin), lambda n, i: (0, 0, 0)),
                pl.BlockSpec((F_hidden, 1), lambda n, i: (0, 0)),
                pl.BlockSpec((C_out, F_hidden), lambda n, i: (0, 0)),
                pl.BlockSpec((C_out, 1), lambda n, i: (0, 0)),
            ],
            out_specs=pl.BlockSpec((1, C_out, TH * W_pad), lambda n, i: (n, 0, i)),
        ),
        compiler_params=pltpu.CompilerParams(
            dimension_semantics=("parallel", "parallel"),
            # A few MiB/tile even at 16K lanes -> ample headroom on v5e/v6e and
            # inside v7x's 64 MiB physical VMEM.
            vmem_limit_bytes=32 * 1024 * 1024,
        ),
    )(xt, w1r, b1c, w2r, b2c)

    logits = out.reshape(N, C_out, H_pad, W_pad)[:, :, :H, :W]
    return {"out": logits}                # bf16 logits (serving dtype)


def segmentation_model_output_wrapper(x_nchw, w1, b1, w2, b2):
    """Equivalent of SegmentationModelOutputWrapper.forward: model(x)['out']."""
    return _model_forward(x_nchw, w1, b1, w2, b2)["out"]


def _reference_forward(x_nchw, w1, b1, w2, b2):
    """Plain-JAX (XLA conv, f32) reference for correctness checking."""
    dn = ("NCHW", "OIHW", "NCHW")
    h = lax.conv_general_dilated(x_nchw, w1, (1, 1), "SAME", dimension_numbers=dn)
    h = jnp.maximum(h + b1[None, :, None, None], 0.0)
    o = lax.conv_general_dilated(h, w2, (1, 1), "SAME", dimension_numbers=dn)
    return o + b2[None, :, None, None]


if __name__ == "__main__":
    key = jax.random.PRNGKey(0)
    kx, k1, k2, k3, k4 = jax.random.split(key, 5)

    N, Cin, H, W = 2, 4, 16, 16       # input x: NCHW like PyTorch
    F_hidden, C_out = 32, 8           # hidden channels, num_classes

    x = jax.random.normal(kx, (N, Cin, H, W), jnp.float32)
    w1 = jax.random.normal(k1, (F_hidden, Cin, 3, 3), jnp.float32) * 0.1
    b1 = jax.random.normal(k2, (F_hidden,), jnp.float32) * 0.1
    w2 = jax.random.normal(k3, (C_out, F_hidden, 1, 1), jnp.float32) * 0.1
    b2 = jax.random.normal(k4, (C_out,), jnp.float32) * 0.1

    out = segmentation_model_output_wrapper(x, w1, b1, w2, b2)
    jax.block_until_ready(out)

    ref = _reference_forward(x, w1, b1, w2, b2)
    assert out.shape == (N, C_out, H, W), out.shape
    # bf16 MXU inputs + bf16 output store -> loosened tolerance vs f32 XLA ref.
    assert jnp.allclose(out.astype(jnp.float32), ref, atol=3e-2, rtol=3e-2), \
        "mismatch vs XLA reference"

    print("KERNEL_OK")
</pallas_src>

<mosaic_0001>
module attributes {stable_mosaic.version = 11 : i64} {
  func.func @_seg_head_kernel(%arg0: i32, %arg1: i32, %arg2: memref<1x1x12x1280xbf16, #tpu.memory_space<vmem>>, %arg3: memref<3x32x12xbf16, #tpu.memory_space<vmem>>, %arg4: memref<32x1xf32, #tpu.memory_space<vmem>>, %arg5: memref<8x32xbf16, #tpu.memory_space<vmem>>, %arg6: memref<8x1xf32, #tpu.memory_space<vmem>>, %arg7: memref<1x8x1024xbf16, #tpu.memory_space<vmem>>) attributes {dimension_semantics = [#tpu.dimension_semantics<parallel>, #tpu.dimension_semantics<parallel>], iteration_bounds = array<i64: 2, 2>, scalar_prefetch = 0 : i64, scratch_operands = 0 : i64, tpu.core_type = #tpu.core_type<tc>, window_params = [{transform_indices = @transform_0, window_bounds = array<i64: 1, 1, 12, 1280>}, {pipeline_mode = #tpu.pipeline_mode<synchronous>, transform_indices = @transform_1, window_bounds = array<i64: 3, 32, 12>}, {pipeline_mode = #tpu.pipeline_mode<synchronous>, transform_indices = @transform_2, window_bounds = array<i64: 32, 1>}, {pipeline_mode = #tpu.pipeline_mode<synchronous>, transform_indices = @transform_3, window_bounds = array<i64: 8, 32>}, {pipeline_mode = #tpu.pipeline_mode<synchronous>, transform_indices = @transform_4, window_bounds = array<i64: 8, 1>}, {transform_indices = @transform_5, window_bounds = array<i64: 1, 8, 1024>}]} {
    %c0 = arith.constant 0 : index
    %c0_0 = arith.constant 0 : index
    %c0_1 = arith.constant 0 : index
    %0 = vector.load %arg3[%c0, %c0_0, %c0_1] : memref<3x32x12xbf16, #tpu.memory_space<vmem>>, vector<1x32x12xbf16>
    %1 = vector.shape_cast %0 : vector<1x32x12xbf16> to vector<32x12xbf16>
    %c0_2 = arith.constant 0 : index
    %c0_3 = arith.constant 0 : index
    %c0_4 = arith.constant 0 : index
    %c0_5 = arith.constant 0 : index
    %2 = vector.load %arg2[%c0_2, %c0_3, %c0_4, %c0_5] : memref<1x1x12x1280xbf16, #tpu.memory_space<vmem>>, vector<1x1x12x1024xbf16>
    %3 = vector.shape_cast %2 : vector<1x1x12x1024xbf16> to vector<12x1024xbf16>
    %cst = arith.constant dense<0.000000e+00> : vector<32x1024xf32>
    %4 = tpu.matmul %1, %3, %cst {dimension_numbers = #tpu.dot_dimension_numbers<[1], [0], [0], [1], [0, 0, 1, 1], [], []>} : vector<32x12xbf16>, vector<12x1024xbf16>, vector<32x1024xf32> -> vector<32x1024xf32>
    %c1 = arith.constant 1 : index
    %c0_6 = arith.constant 0 : index
    %c0_7 = arith.constant 0 : index
    %5 = vector.load %arg3[%c1, %c0_6, %c0_7] : memref<3x32x12xbf16, #tpu.memory_space<vmem>>, vector<1x32x12xbf16>
    %6 = vector.shape_cast %5 : vector<1x32x12xbf16> to vector<32x12xbf16>
    %c0_8 = arith.constant 0 : index
    %c0_9 = arith.constant 0 : index
    %c0_10 = arith.constant 0 : index
    %c128 = arith.constant 128 : index
    %7 = vector.load %arg2[%c0_8, %c0_9, %c0_10, %c128] : memref<1x1x12x1280xbf16, #tpu.memory_space<vmem>>, vector<1x1x12x1024xbf16>
    %8 = vector.shape_cast %7 : vector<1x1x12x1024xbf16> to vector<12x1024xbf16>
    %cst_11 = arith.constant dense<0.000000e+00> : vector<32x1024xf32>
    %9 = tpu.matmul %6, %8, %cst_11 {dimension_numbers = #tpu.dot_dimension_numbers<[1], [0], [0], [1], [0, 0, 1, 1], [], []>} : vector<32x12xbf16>, vector<12x1024xbf16>, vector<32x1024xf32> -> vector<32x1024xf32>
    %10 = arith.addf %4, %9 : vector<32x1024xf32>
    %c2 = arith.constant 2 : index
    %c0_12 = arith.constant 0 : index
    %c0_13 = arith.constant 0 : index
    %11 = vector.load %arg3[%c2, %c0_12, %c0_13] : memref<3x32x12xbf16, #tpu.memory_space<vmem>>, vector<1x32x12xbf16>
    %12 = vector.shape_cast %11 : vector<1x32x12xbf16> to vector<32x12xbf16>
    %c0_14 = arith.constant 0 : index
    %c0_15 = arith.constant 0 : index
    %c0_16 = arith.constant 0 : index
    %c256 = arith.constant 256 : index
    %13 = vector.load %arg2[%c0_14, %c0_15, %c0_16, %c256] : memref<1x1x12x1280xbf16, #tpu.memory_space<vmem>>, vector<1x1x12x1024xbf16>
    %14 = vector.shape_cast %13 : vector<1x1x12x1024xbf16> to vector<12x1024xbf16>
    %cst_17 = arith.constant dense<0.000000e+00> : vector<32x1024xf32>
    %15 = tpu.matmul %12, %14, %cst_17 {dimension_numbers = #tpu.dot_dimension_numbers<[1], [0], [0], [1], [0, 0, 1, 1], [], []>} : vector<32x12xbf16>, vector<12x1024xbf16>, vector<32x1024xf32> -> vector<32x1024xf32>
    %16 = arith.addf %10, %15 : vector<32x1024xf32>
    %c0_18 = arith.constant 0 : index
    %c0_19 = arith.constant 0 : index
    %17 = vector.load %arg4[%c0_18, %c0_19] : memref<32x1xf32, #tpu.memory_space<vmem>>, vector<32x1xf32>
    %18 = vector.broadcast %17 : vector<32x1xf32> to vector<32x1024xf32>
    %19 = arith.addf %16, %18 : vector<32x1024xf32>
    %cst_20 = arith.constant 0.000000e+00 : f32
    %20 = vector.broadcast %cst_20 : f32 to vector<32x1024xf32>
    %21 = arith.maximumf %19, %20 : vector<32x1024xf32>
    %c0_21 = arith.constant 0 : index
    %c0_22 = arith.constant 0 : index
    %22 = vector.load %arg5[%c0_21, %c0_22] : memref<8x32xbf16, #tpu.memory_space<vmem>>, vector<8x32xbf16>
    %23 = arith.truncf %21 : vector<32x1024xf32> to vector<32x1024xbf16>
    %cst_23 = arith.constant dense<0.000000e+00> : vector<8x1024xf32>
    %24 = tpu.matmul %22, %23, %cst_23 {dimension_numbers = #tpu.dot_dimension_numbers<[1], [0], [0], [1], [0, 0, 1, 1], [], []>} : vector<8x32xbf16>, vector<32x1024xbf16>, vector<8x1024xf32> -> vector<8x1024xf32>
    %c0_24 = arith.constant 0 : index
    %c0_25 = arith.constant 0 : index
    %25 = vector.load %arg6[%c0_24, %c0_25] : memref<8x1xf32, #tpu.memory_space<vmem>>, vector<8x1xf32>
    %26 = vector.broadcast %25 : vector<8x1xf32> to vector<8x1024xf32>
    %27 = arith.addf %24, %26 : vector<8x1024xf32>
    %28 = arith.truncf %27 : vector<8x1024xf32> to vector<8x1024xbf16>
    %c0_26 = arith.constant 0 : index
    %c0_27 = arith.constant 0 : index
    %c0_28 = arith.constant 0 : index
    %29 = vector.load %arg7[%c0_26, %c0_27, %c0_28] : memref<1x8x1024xbf16, #tpu.memory_space<vmem>>, vector<1x8x1024xbf16>
    %30 = vector.shape_cast %29 : vector<1x8x1024xbf16> to vector<8x1024xbf16>
    %31 = vector.shape_cast %28 : vector<8x1024xbf16> to vector<1x8x1024xbf16>
    tpu.vector_store %arg7[%c0_26, %c0_27, %c0_28], %31 {strides = array<i32>} : memref<1x8x1024xbf16, #tpu.memory_space<vmem>>, vector<1x8x1024xbf16>,
    return
  }
  func.func @transform_0(%arg0: i32, %arg1: i32) -> (i32, i32, i32, i32) {
    %c0_i32 = arith.constant 0 : i32
    %c0_i32_0 = arith.constant 0 : i32
    %c0_i32_1 = arith.constant 0 : i32
    return %arg0, %arg1, %c0_i32, %c0_i32_0 : i32, i32, i32, i32
  }
  func.func @transform_1(%arg0: i32, %arg1: i32) -> (i32, i32, i32) {
    %c0_i32 = arith.constant 0 : i32
    %c0_i32_0 = arith.constant 0 : i32
    %c0_i32_1 = arith.constant 0 : i32
    %c0_i32_2 = arith.constant 0 : i32
    return %c0_i32, %c0_i32_0, %c0_i32_1 : i32, i32, i32
  }
  func.func @transform_2(%arg0: i32, %arg1: i32) -> (i32, i32) {
    %c0_i32 = arith.constant 0 : i32
    %c0_i32_0 = arith.constant 0 : i32
    %c0_i32_1 = arith.constant 0 : i32
    return %c0_i32, %c0_i32_0 : i32, i32
  }
  func.func @transform_3(%arg0: i32, %arg1: i32) -> (i32, i32) {
    %c0_i32 = arith.constant 0 : i32
    %c0_i32_0 = arith.constant 0 : i32
    %c0_i32_1 = arith.constant 0 : i32
    return %c0_i32, %c0_i32_0 : i32, i32
  }
  func.func @transform_4(%arg0: i32, %arg1: i32) -> (i32, i32) {
    %c0_i32 = arith.constant 0 : i32
    %c0_i32_0 = arith.constant 0 : i32
    %c0_i32_1 = arith.constant 0 : i32
    return %c0_i32, %c0_i32_0 : i32, i32
  }
  func.func @transform_5(%arg0: i32, %arg1: i32) -> (i32, i32, i32) {
    %c0_i32 = arith.constant 0 : i32
    %c0_i32_0 = arith.constant 0 : i32
    return %arg0, %c0_i32, %arg1 : i32, i32, i32
  }
}

</mosaic_0001>

<bundles_post_ra>
// kernel: tpu_custom_call.1
= control target key start
LH: loop header
LB: loop body
LE: loop exit
PB: predicated region body
PF: predicated region fallthrough
CT: control target
= control target key end

     0   :  { %10 = vsyncpa [#allocation3], 0  ;;  %s2325_s0 = inlined_call_operand.vmem [shape: bf16[2,2,12,1280], index: 0, kind: input, shape index: {}]   ;;  %s2326_s1 = inlined_call_operand.vmem [shape: bf16[3,32,12], index: 1, kind: input, shape index: {}]   ;;  %s2327_s2 = inlined_call_operand.vmem [shape: f32[32,1], index: 2, kind: input, shape index: {}]   ;;  %s2328_s3 = inlined_call_operand.vmem [shape: bf16[8,32], index: 3, kind: input, shape index: {}]   ;;  %s2329_s4 = inlined_call_operand.vmem [shape: f32[8,1], index: 4, kind: input, shape index: {}]   ;;  %s2330_s5 = inlined_call_operand.hbm [shape: bf16[2,8,2048], index: 5, kind: output, shape index: {}]  }
   0x1   :  { %12 = vsyncpa [#allocation3 + $0x1], 0  ;;  %s1994_s18 = smov 0   ;;  %s1996_s19 = smov 0  }
   0x2   :  { %s1998_s20 = smov 0   ;;  %s2000_s21 = smov 0  }
   0x3   :  { %s2002_s22 = smov 0   ;;  %s2004_s23 = smov 0  }
   0x4   :  { %s2006_s24 = smov 0   ;;  %s2008_s25 = smov 0  }
   0x5 LB: > { %s1591_s26 = sadd.s32 4294967295, %s1960_s25   ;;  %s1592_s27 = sadd.s32 4294967294, %s1960_s25   ;;  %s1960_s25 = sphi %s2008_s25, %s18_s25   ;;  %s1956_s24 = sphi %s2006_s24, %s2345_s24   ;;  %s1952_s23 = sphi %s2004_s23, %s2344_s23   ;;  %s1948_s22 = sphi %s2002_s22, %s2343_s22   ;;  %s1944_s21 = sphi %s2000_s21, %s2342_s21   ;;  %s1940_s20 = sphi %s1998_s20, %s2341_s20   ;;  %s1936_s19 = sphi %s1996_s19, %s2340_s19   ;;  %s1932_s18 = sphi %s1994_s18, %s2339_s18  }
   0x6   : > { %s27_s28 = sadd.s32 1, %s1952_s23  ;;  %s30_s29 = sadd.s32 1, %s1956_s24 }
   0x7   : > { %p28_p0 = scmp.ge.s32.totalorder %s27_s28, 2  ;;  %p161_p1 = scmp.ne.s32.totalorder %s1940_s20, %s1936_s19 }
   0x8   : > { %p162_p2 = scmp.eq.s32.totalorder %s1591_s26, 3  ;;  %p167_p5 = scmp.ne.s32.totalorder %s1936_s19, %s1932_s18 }
   0x9   : > { %s2347_s28 = smov (%p28_p0, %s27_s28), 0  ;;  %s2349_s29 = smov (!%p28_p0, %s30_s29), %s1956_s24 }
   0xa   : > { %2333 = sst [smem:[#allocation5_spill]] %s2347_s28  ;;  %s147_s30 = ssub.s32 %s1952_s23, %s2347_s28 }
   0xb   : > { %p2045_p3 = por %p162_p2, %p161_p1  ;;  %p32_p4 = scmp.ge.s32.totalorder %s2349_s29, 2 }
   0xc   : > { %p168_p6 = scmp.eq.s32.totalorder %s1592_s27, 3  ;;  %p1595_p7 = scmp.ge.s32.totalorder %s1960_s25, 1 }
   0xd   : > { %s2351_s29 = smov (%p32_p4, %s2349_s29), 0  ;;  %p210_p9 = scmp.lt.s32.totalorder %s1960_s25, 5 }
   0xe   : > { %2335 = sst [smem:[#allocation6_spill]] %s2351_s29  ;;  %p2054_p8 = por %p168_p6, %p167_p5 }
   0xf   : > { %s146_s8 = ssub.s32 %s1956_s24, %s2351_s29  ;;  %s151_s9 = sadd.s32 1, %s1940_s20 }
  0x10   : > { %s148_s10 = sor.u32 %s147_s30, %s146_s8  ;;  %p211_p10 = pnand %p1595_p7, %p210_p9 }
  0x11   : > { %p149_p11 = scmp.eq.s32.totalorder %s148_s10, 0  ;;  %p242_p12 = scmp.lt.s32.totalorder (!%p211_p10), %s1948_s22, 1  ;;  %v1962_v0 = vmov (!%p211_p10), 0   ;;  %v1177_v1 = vld [vmem:[%s2327_s2] sm:$0xff] (!%p211_p10)  ;;  %v1179_v2 = vld [vmem:[%s2327_s2 + $0x10] sm:$0xff] (!%p211_p10)  ;;  %v1178_v3 = vld [vmem:[%s2327_s2 + $0x8] sm:$0xff] (!%p211_p10) }
  0x12   : > { %214 = sbr.rel (%p211_p10) target bundleno = 583 (0x247), region = 40  ;;  %p244_p13 = scmp.lt.s32.totalorder (!%p211_p10), %s1944_s21, 1  ;;  %384 = vmatprep.mubr.bf16.mxu0 (!%p211_p10), %v1962_v0  ;;  %437 = vmatprep.mubr.bf16.mxu1 (!%p211_p10), %v1962_v0  ;;  %vm327_vm0 = vcmask (!%p211_p10), 1045504   ;;  %vm320_vm1 = vcmask (!%p211_p10), 97280   ;;  %v1180_v4 = vld [vmem:[%s2327_s2 + $0x18] sm:$0xff] (!%p211_p10)  ;;  %v1282_v7 = vld [vmem:[%s2329_s4] sm:$0xff] (!%p211_p10) }
  0x13   : > { %s2063_s11 = scalar_select %p149_p11, %s1940_s20, %s151_s9  }
  0x14   : > { %1828 = vset.pattern.permute.xlu0 (!%p211_p10), %v1962_v0  ;;  %1829 = vset.pattern.permute.xlu1 (!%p211_p10), %v1962_v0  ;;  %v1836_v10 = vld [vmem:[%s2326_s1 + $0x10] sm:$0xff] (!%p211_p10)   ;;  %v1843_v23 = vld [vmem:[%s2326_s1 + $0x18] sm:$0xff] (!%p211_p10)   ;;  %v1849_v38 = vld [vmem:[%s2326_s1] sm:$0xff] (!%p211_p10)   ;;  %vm1288_vm2 = vcmask (!%p211_p10), 261120   ;;  %s239_s29 = sand.u32 (!%p211_p10), 1, %s1936_s19   ;;  %s1682_s27 = sshll.u32 (!%p211_p10), %s1948_s22, 4 }
  0x15   : > { %1183 = vperm.xlu0 (!%p211_p10), %1828, %v1177_v1   ;;  %1193 = vperm.xlu1 (!%p211_p10), %1829, %v1179_v2   ;;  %v1854_v45 = vld [vmem:[%s2326_s1 + $0x8] sm:$0xff] (!%p211_p10)   ;;  %v1859_v54 = vld [vmem:[%s2326_s1 + $0x20] sm:$0xff] (!%p211_p10)   ;;  %s1596_s16 = sshll.u32 (!%p211_p10), %s239_s29, 5 }
  0x16   : > { %v1865_v56 = vld [vmem:[%s2326_s1 + $0x28] sm:$0xff] (!%p211_p10)   ;;  %s241_s17 = scalar_lea.vmem (!%p211_p10), [#allocation2], %s1596_s16 }
  0x17   : > { %s1509_s9 = sshll.u32 (!%p211_p10), %s241_s17, 4  ;;  %s2272_s9 = int_to_ptr.vmem [resolvable:$true] %s1509_s9 }
  0x19   : > { %s243_s12 = scalar_select %p242_p12, %s1948_s22, 1  ;;  %1188 = vperm.xlu0 %1828, %v1178_v3   ;;  %1198 = vperm.xlu1 %1829, %v1180_v4  }
  0x1a   : > { %s245_s13 = scalar_select %p244_p13, %s1944_s21, 1 }
  0x1b   : > { %s1755_s14 = smul.u32 40, %s243_s12 }
  0x1c   : > { %s1754_s15 = smul.u32 20, %s245_s13  ;;  %s1866_s13 = scalar_lea.vmem %s2272_s9, 512 }
  0x1d   : > { %1285 = vperm.xlu0 %1828, %v1282_v7   ;;  %p1867_p0 = scmp.ne.s32.totalorder %s2272_s9, %s1866_s13 }
  0x1e   : > { %s248_s26 = sadd.s32 %s1755_s14, %s1754_s15  ;;  %s1963_s14 = smov [#allocation2]  }
  0x1f   : > { %s1597_s8 = sshll.u32 %s248_s26, 2  ;;  %s1681_s26 = sshll.u32 %s1944_s21, 3 }
  0x20   : > { %s2085_s12 = scalar_lea.vmem %s2325_s0, %s1597_s8  ;;  %s1505_s30 = sadd.s32 %s1682_s27, %s1681_s26 }
  0x21   : > { %v1830_v5 = vld [vmem:[%s2085_s12 + $0x8] ss:$40 sps:$4 sm:$0x3f]   ;;  %v1834_v8 = vld [vmem:[%s2085_s12 + $0x4] ss:$40 sps:$4 sm:$0x3f]   ;;  %p1868_p1 = pnand %p1867_p0, %p2045_p3 }
  0x22   : > { %v1832_v6 = vld [vmem:[%s2085_s12 + $0x10] ss:$40 sps:$4 sm:$0x3f]   ;;  %1612 = vmatprep.subr.msk.bf16.mxu0 %vm327_vm0, %v1830_v5  ;;  %v1835_v9 = vld [vmem:[%s2085_s12 + $0xc] ss:$40 sps:$4 sm:$0x3f]  }
  0x23   : > { %1615 = vmatprep.subr.msk.bf16.mxu1 %vm327_vm0, %v1832_v6  ;;  %v1837_v11 = vld [vmem:[%s2085_s12 + $0x18] ss:$40 sps:$4 sm:$0x3f]   ;;  %v329_v12 = vsel %vm327_vm0, %v1834_v8, 0  ;;  %v335_v13 = vsel %vm327_vm0, %v1835_v9, 0  ;;  %v2110_v17 = vld [vmem:[%s2085_s12 + $0x8] sm:$0xff]  ;;  %p1869_p2 = pneg %p1868_p1 }
  0x24   : > { %353 = vmatpush1.bf16.msra.mxu0 %v329_v12  ;;  %406 = vmatpush1.bf16.msra.mxu1 %v335_v13  ;;  %v1839_v14 = vld [vmem:[%s2085_s12 + $0x20] ss:$40 sps:$4 sm:$0x3f]   ;;  %v1841_v15 = vld [vmem:[%s2085_s12 + $0x14] ss:$40 sps:$4 sm:$0x3f]  }
  0x25   : > { %1618 = vmatprep.subr.msk.bf16.mxu0 %vm327_vm0, %v1837_v11  ;;  %v1842_v16 = vld [vmem:[%s2085_s12 + $0x1c] ss:$40 sps:$4 sm:$0x3f]   ;;  %1621 = vmatprep.subr.msk.bf16.mxu1 %vm327_vm0, %v1839_v14  ;;  %v341_v18 = vsel %vm327_vm0, %v1841_v15, 0  ;;  %v262_v20 = vld [vmem:[%s2085_s12 + $0x30] sm:$0x33] }
  0x26   : > { %v1844_v19 = vld [vmem:[%s2085_s12 + $0x4] ss:$40 sps:$4 sm:$0x3f]   ;;  %v347_v21 = vsel %vm327_vm0, %v1842_v16, 0  ;;  %v1629_v22 = vcombine.high %v2110_v17, %v262_v20  ;;  %v1628_v27 = vcombine.low %v2110_v17, %v262_v20  ;;  %v259_v28 = vld [vmem:[%s2085_s12 + $0x10] sm:$0xff]  ;;  %v260_v30 = vld [vmem:[%s2085_s12 + $0x18] sm:$0xff] }
  0x27   : > { %1613 = vmatmul.mubr.msk.bf16.vlgmr.msra.gmra.mrb[0].mxu0 %vm320_vm1, %v1836_v10  ;;  %1616 = vmatmul.mubr.msk.bf16.vlgmr.msra.gmra.mrb[0].mxu1 %vm320_vm1, %v1836_v10  ;;  %v1864_v24 = vld [vmem:[%s2085_s12 + $0x20] ss:$40 sps:$4 sm:$0x3f]   ;;  %v263_v29 = vld [vmem:[%s2085_s12 + $0x38] sm:$0x33]  ;;  %s1683_s8 = sshll.u32 %s1505_s30, 6 }
  0x28   : > { %459 = vmatpush1.bf16.msra.mxu0 %v341_v18  ;;  %512 = vmatpush1.bf16.msra.mxu1 %v347_v21  ;;  %v2129_v25 = vsel %vm327_vm0, %v1864_v24, 0  ;;  %v1847_v26 = vld [vmem:[%s2085_s12] ss:$40 sps:$4 sm:$0x3f]   ;;  %v619_v33 = vsel %vm327_vm0, %v1628_v27, 0  ;;  %v1631_v34 = vcombine.high %v259_v28, %v263_v29  ;;  %v1630_v36 = vcombine.low %v259_v28, %v263_v29  ;;  %s2270_s10 = scalar_lea.hbm %s2330_s5, %s1683_s8  ;;  %s1870_s15 = sshll.u32 %s1963_s14, 4  ;;  %s1871_s15 = int_to_ptr.vmem [resolvable:$false] %s1870_s15 }
  0x29   : > { %394 = vmatprep.mubr.bf16.mxu0 %v1962_v0  ;;  %447 = vmatprep.mubr.bf16.mxu1 %v1962_v0  ;;  %v264_v31 = vld [vmem:[%s2085_s12 + $0x40] sm:$0x33]  ;;  %v613_v32 = vsel %vm327_vm0, %v1847_v26, 0  ;;  %v857_v39 = vld [vmem:[%s2085_s12 + $0x30] sm:$0x33]  ;;  %s1872_s28 = scalar_lea.vmem %s1871_s15, 1024  ;;  %p1873_p4 = scmp.lt.s32.totalorder %s2272_s9, %s1871_s15 }
  0x2a   : > { %1634 = vmatprep.subr.msk.bf16.mxu0 %vm327_vm0, %v1844_v19  ;;  %1637 = vmatprep.subr.msk.bf16.mxu1 %vm327_vm0, %v1629_v22  ;;  %v1633_v35 = vcombine.high %v260_v30, %v264_v31  ;;  %v1632_v37 = vcombine.low %v260_v30, %v264_v31  ;;  %v858_v40 = vld [vmem:[%s2085_s12 + $0x38] sm:$0x33]  ;;  %v625_v41 = vsel %vm327_vm0, %v1630_v36, 0  ;;  %v1653_v43 = vcombine.high %v2110_v17, %v857_v39  ;;  %v859_v48 = vld [vmem:[%s2085_s12 + $0x40] sm:$0x33]  ;;  %p1874_p5 = scmp.lt.s32.totalorder %s1872_s28, %s1866_s13 }
  0x2b   : > { %v1655_v44 = vcombine.high %v259_v28, %v858_v40  ;;  %v1652_v46 = vcombine.low %v2110_v17, %v857_v39  ;;  %v1654_v47 = vcombine.low %v259_v28, %v858_v40  ;;  %v1657_v51 = vcombine.high %v260_v30, %v859_v48  ;;  %v1861_v52 = vld [vmem:[%s2085_s12 + $0x24] ss:$40 sps:$4 sm:$0x3f]   ;;  %s1493_s12 = scalar_lea.sflag [#allocation3], %s239_s29 }
  0x2c   : > { %v631_v42 = vsel %vm327_vm0, %v1632_v37, 0  ;;  %v1656_v53 = vcombine.low %v260_v30, %v859_v48  ;;  %p1875_p6 = por %p1874_p5, %p1873_p4 }
  0x2d   : > { %v910_v49 = vsel %vm327_vm0, %v1652_v46, 0  ;;  %v916_v50 = vsel %vm327_vm0, %v1654_v47, 0 }
  0x2e   : > { %v922_v55 = vsel %vm327_vm0, %v1656_v53, 0  ;;  %p1876_p7 = pnand %p1875_p6, %p1869_p2 }
  0x2f   : > { %1614 = vmatmul.mubr.msk.bf16.gmra.mrb[4].mxu0 %vm320_vm1, %v1843_v23  ;;  %1617 = vmatmul.mubr.msk.bf16.gmra.mrb[4].mxu1 %vm320_vm1, %v1843_v23 }
  0x30   : > { %490 = vmatprep.mubr.bf16.mxu0 %v1962_v0  ;;  %543 = vmatprep.mubr.bf16.mxu1 %v1962_v0 }
  0x37   : > { %1619 = vmatmul.mubr.msk.bf16.vlgmr.msra.gmra.mrb[8].mxu0 %vm320_vm1, %v1836_v10  ;;  %1622 = vmatmul.mubr.msk.bf16.vlgmr.msra.gmra.mrb[8].mxu1 %vm320_vm1, %v1836_v10 }
  0x38   : > { %637 = vmatpush1.bf16.msra.mxu0 %v613_v32  ;;  %690 = vmatpush1.bf16.msra.mxu1 %v619_v33 }
  0x39   : > { %500 = vmatprep.mubr.bf16.mxu0 %v1962_v0  ;;  %553 = vmatprep.mubr.bf16.mxu1 %v1962_v0 }
  0x3a   : > { %1640 = vmatprep.subr.msk.bf16.mxu0 %vm327_vm0, %v1631_v34  ;;  %1643 = vmatprep.subr.msk.bf16.mxu1 %vm327_vm0, %v1633_v35 }
  0x3f   : > { %1620 = vmatmul.mubr.msk.bf16.gmra.mrb[12].mxu0 %vm320_vm1, %v1843_v23  ;;  %1623 = vmatmul.mubr.msk.bf16.gmra.mrb[12].mxu1 %vm320_vm1, %v1843_v23 }
  0x40   : > { %668 = vmatprep.mubr.bf16.mxu0 %v1962_v0  ;;  %721 = vmatprep.mubr.bf16.mxu1 %v1962_v0 }
  0x47   : > { %1635 = vmatmul.mubr.msk.bf16.vlgmr.msra.gmra.mrb[0].mxu0 %vm320_vm1, %v1849_v38  ;;  %1638 = vmatmul.mubr.msk.bf16.vlgmr.msra.gmra.mrb[0].mxu1 %vm320_vm1, %v1849_v38 }
  0x48   : > { %743 = vmatpush1.bf16.msra.mxu0 %v625_v41  ;;  %796 = vmatpush1.bf16.msra.mxu1 %v631_v42 }
  0x49   : > { %678 = vmatprep.mubr.bf16.mxu0 %v1962_v0  ;;  %731 = vmatprep.mubr.bf16.mxu1 %v1962_v0 }
  0x4a   : > { %1660 = vmatprep.subr.msk.bf16.mxu0 %vm327_vm0, %v1653_v43  ;;  %1663 = vmatprep.subr.msk.bf16.mxu1 %vm327_vm0, %v1655_v44 }
  0x4f   : > { %1636 = vmatmul.mubr.msk.bf16.gmra.mrb[4].mxu0 %vm320_vm1, %v1854_v45  ;;  %1639 = vmatmul.mubr.msk.bf16.gmra.mrb[4].mxu1 %vm320_vm1, %v1854_v45 }
  0x50   : > { %774 = vmatprep.mubr.bf16.mxu0 %v1962_v0  ;;  %827 = vmatprep.mubr.bf16.mxu1 %v1962_v0 }
  0x57   : > { %1641 = vmatmul.mubr.msk.bf16.vlgmr.msra.gmra.mrb[8].mxu0 %vm320_vm1, %v1849_v38  ;;  %1644 = vmatmul.mubr.msk.bf16.vlgmr.msra.gmra.mrb[8].mxu1 %vm320_vm1, %v1849_v38 }
  0x58   : > { %934 = vmatpush1.bf16.msra.mxu0 %v910_v49  ;;  %987 = vmatpush1.bf16.msra.mxu1 %v916_v50 }
  0x59   : > { %784 = vmatprep.mubr.bf16.mxu0 %v1962_v0  ;;  %837 = vmatprep.mubr.bf16.mxu1 %v1962_v0 }
  0x5a   : > { %1666 = vmatprep.subr.msk.bf16.mxu0 %vm327_vm0, %v1657_v51  ;;  %1669 = vmatprep.subr.msk.bf16.mxu1 %vm327_vm0, %v1861_v52 }
  0x5f   : > { %1642 = vmatmul.mubr.msk.bf16.gmra.mrb[12].mxu0 %vm320_vm1, %v1854_v45  ;;  %1645 = vmatmul.mubr.msk.bf16.gmra.mrb[12].mxu1 %vm320_vm1, %v1854_v45 }
  0x60   : > { %965 = vmatprep.mubr.bf16.mxu0 %v1962_v0  ;;  %1018 = vmatprep.mubr.bf16.mxu1 %v1962_v0 }
  0x67   : > { %1661 = vmatmul.mubr.msk.bf16.vlgmr.msra.gmra.mrb[0].mxu0 %vm320_vm1, %v1859_v54  ;;  %1664 = vmatmul.mubr.msk.bf16.vlgmr.msra.gmra.mrb[0].mxu1 %vm320_vm1, %v1859_v54 }
  0x68   : > { %1040 = vmatpush1.bf16.msra.mxu0 %v922_v55  ;;  %1093 = vmatpush1.bf16.msra.mxu1 %v2129_v25 }
  0x69   : > { %975 = vmatprep.mubr.bf16.mxu0 %v1962_v0  ;;  %1028 = vmatprep.mubr.bf16.mxu1 %v1962_v0 }
  0x6f   : > { %1662 = vmatmul.mubr.msk.bf16.gmra.mrb[4].mxu0 %vm320_vm1, %v1865_v56  ;;  %1665 = vmatmul.mubr.msk.bf16.gmra.mrb[4].mxu1 %vm320_vm1, %v1865_v56 }
  0x70   : > { %1071 = vmatprep.mubr.bf16.mxu0 %v1962_v0  ;;  %1124 = vmatprep.mubr.bf16.mxu1 %v1962_v0 }
  0x77   : > { %1667 = vmatmul.mubr.msk.bf16.vlgmr.msra.gmra.mrb[8].mxu0 %vm320_vm1, %v1859_v54  ;;  %1670 = vmatmul.mubr.msk.bf16.vlgmr.msra.gmra.mrb[8].mxu1 %vm320_vm1, %v1859_v54 }
  0x78   : > { %1081 = vmatprep.mubr.bf16.mxu0 %v1962_v0  ;;  %1134 = vmatprep.mubr.bf16.mxu1 %v1962_v0 }
  0x7f   : > { %1668 = vmatmul.mubr.msk.bf16.gmra.mrb[12].mxu0 %vm320_vm1, %v1865_v56  ;;  %1671 = vmatmul.mubr.msk.bf16.gmra.mrb[12].mxu1 %vm320_vm1, %v1865_v56 }
  0x80   : > { %1324 = vmatprep.mubr.bf16.mxu0 %v1962_v0  ;;  %1365 = vmatprep.mubr.bf16.mxu1 %v1962_v0 }
  0x94   : > { %v2213_v57 = vpop.permute.xlu0 %1183  ;;  %v2217_v59 = vpop.permute.xlu1 %1193 }
  0x98   : > { %v2215_v58 = vpop.permute.xlu0 %1188  ;;  %v2227_v23 = vpop.permute.xlu1 %1198 }
 0x13a   : > { %v967_v60 = vpop.f32.mrb[0].mxu0  ;;  %v1020_v61 = vpop.f32.mrb[0].mxu1 }
 0x13b   : > { %v1201_v62 = vadd.f32 %v2213_v57, %v967_v60  ;;  %v1203_v63 = vadd.f32 %v2213_v57, %v1020_v61  ;;  %v969_v1 = vpop.f32.mrb[1].mxu0  ;;  %v1022_v2 = vpop.f32.mrb[1].mxu1 }
 0x13c   : > { %v1202_v3 = vadd.f32 %v2213_v57, %v969_v1  ;;  %v1204_v4 = vadd.f32 %v2213_v57, %v1022_v2  ;;  %v971_v5 = vpop.f32.mrb[2].mxu0  ;;  %v1024_v6 = vpop.f32.mrb[2].mxu1 }
 0x13d   : > { %v1209_v7 = vadd.f32 %v2215_v58, %v971_v5  ;;  %v1211_v8 = vadd.f32 %v2215_v58, %v1024_v6  ;;  %v973_v9 = vpop.f32.mrb[3].mxu0  ;;  %v1026_v10 = vpop.f32.mrb[3].mxu1  ;;  %v1233_v13 = vmax.f32 %v1201_v62, 0.0  ;;  %v1235_v14 = vmax.f32 %v1203_v63, 0.0 }
 0x13e   : > { %v1210_v11 = vadd.f32 %v2215_v58, %v973_v9  ;;  %v1212_v12 = vadd.f32 %v2215_v58, %v1026_v10  ;;  %v1234_v17 = vmax.f32 %v1202_v3, 0.0  ;;  %v1236_v18 = vmax.f32 %v1204_v4, 0.0 }
 0x13f   : > { %v1241_v15 = vmax.f32 %v1209_v7, 0.0  ;;  %v1243_v16 = vmax.f32 %v1211_v8, 0.0  ;;  %v1265_v8 = vld [vmem:[%s2328_s3] sm:$0xf] }
 0x140   : > { %v1242_v19 = vmax.f32 %v1210_v11, 0.0  ;;  %v1244_v20 = vmax.f32 %v1212_v12, 0.0 }
 0x141   : > { %v1266_v21 = vpack.c.bf16 %v1241_v15, %v1233_v13  ;;  %v1268_v22 = vpack.c.bf16 %v1243_v16, %v1235_v14 }
 0x142   : > { %v1267_v24 = vpack.c.bf16 %v1242_v19, %v1234_v17  ;;  %v1269_v25 = vpack.c.bf16 %v1244_v20, %v1236_v18  ;;  %v977_v26 = vpop.f32.mrb[4].mxu0  ;;  %v1030_v27 = vpop.f32.mrb[4].mxu1 }
 0x143   : > { %v1217_v28 = vadd.f32 %v2217_v59, %v977_v26  ;;  %v1219_v29 = vadd.f32 %v2217_v59, %v1030_v27  ;;  %v979_v30 = vpop.f32.mrb[5].mxu0  ;;  %v1032_v31 = vpop.f32.mrb[5].mxu1 }
 0x144   : > { %v1218_v32 = vadd.f32 %v2217_v59, %v979_v30  ;;  %v1220_v33 = vadd.f32 %v2217_v59, %v1032_v31  ;;  %v981_v34 = vpop.f32.mrb[6].mxu0  ;;  %v1034_v35 = vpop.f32.mrb[6].mxu1  ;;  %1292 = vmatprep.subr.bf16.mxu0 %v1267_v24  ;;  %1333 = vmatprep.subr.bf16.mxu1 %v1269_v25 }
 0x145   : > { %v1225_v36 = vadd.f32 %v2227_v23, %v981_v34  ;;  %v1227_v37 = vadd.f32 %v2227_v23, %v1034_v35  ;;  %v983_v38 = vpop.f32.mrb[7].mxu0  ;;  %v1036_v39 = vpop.f32.mrb[7].mxu1  ;;  %1293 = vmatpush1.bf16.msra.mxu0 %v1266_v21  ;;  %1334 = vmatpush1.bf16.msra.mxu1 %v1268_v22  ;;  %v1249_v42 = vmax.f32 %v1217_v28, 0.0  ;;  %v1251_v43 = vmax.f32 %v1219_v29, 0.0 }
 0x146   : > { %v1226_v40 = vadd.f32 %v2227_v23, %v983_v38  ;;  %v1228_v41 = vadd.f32 %v2227_v23, %v1036_v39  ;;  %v1250_v46 = vmax.f32 %v1218_v32, 0.0  ;;  %v1252_v47 = vmax.f32 %v1220_v33, 0.0 }
 0x147   : > { %v1257_v44 = vmax.f32 %v1225_v36, 0.0  ;;  %v1259_v45 = vmax.f32 %v1227_v37, 0.0 }
 0x148   : > { %v1258_v48 = vmax.f32 %v1226_v40, 0.0  ;;  %v1260_v49 = vmax.f32 %v1228_v41, 0.0 }
 0x149   : > { %v1274_v50 = vpack.c.bf16 %v1257_v44, %v1249_v42  ;;  %v1276_v51 = vpack.c.bf16 %v1259_v45, %v1251_v43 }
 0x14a   : > { %v1275_v52 = vpack.c.bf16 %v1258_v48, %v1250_v46  ;;  %v1277_v53 = vpack.c.bf16 %v1260_v49, %v1252_v47  ;;  %v1073_v54 = vpop.f32.mrb[8].mxu0  ;;  %v1126_v55 = vpop.f32.mrb[8].mxu1 }
 0x14b   : > { %v1205_v56 = vadd.f32 %v2213_v57, %v1073_v54  ;;  %v1207_v60 = vadd.f32 %v2213_v57, %v1126_v55  ;;  %v1075_v61 = vpop.f32.mrb[9].mxu0  ;;  %v1128_v62 = vpop.f32.mrb[9].mxu1 }
 0x14c   : > { %v1206_v63 = vadd.f32 %v2213_v57, %v1075_v61  ;;  %v1208_v1 = vadd.f32 %v2213_v57, %v1128_v62  ;;  %v1077_v2 = vpop.f32.mrb[10].mxu0  ;;  %v1130_v3 = vpop.f32.mrb[10].mxu1  ;;  %1294 = vmatprep.subr.bf16.mxu0 %v1275_v52  ;;  %1335 = vmatprep.subr.bf16.mxu1 %v1277_v53 }
 0x14d   : > { %v1213_v4 = vadd.f32 %v2215_v58, %v1077_v2  ;;  %v1215_v5 = vadd.f32 %v2215_v58, %v1130_v3  ;;  %v1079_v6 = vpop.f32.mrb[11].mxu0  ;;  %v1132_v7 = vpop.f32.mrb[11].mxu1  ;;  %1295 = vmatpush1.bf16.msra.mxu0 %v1274_v50  ;;  %1336 = vmatpush1.bf16.msra.mxu1 %v1276_v51  ;;  %v1237_v10 = vmax.f32 %v1205_v56, 0.0  ;;  %v1239_v11 = vmax.f32 %v1207_v60, 0.0 }
 0x14e   : > { %v1214_v9 = vadd.f32 %v2215_v58, %v1079_v6  ;;  %v1216_v57 = vadd.f32 %v2215_v58, %v1132_v7  ;;  %v1238_v14 = vmax.f32 %v1206_v63, 0.0  ;;  %v1240_v15 = vmax.f32 %v1208_v1, 0.0 }
 0x14f   : > { %v1245_v12 = vmax.f32 %v1213_v4, 0.0  ;;  %v1247_v13 = vmax.f32 %v1215_v5, 0.0 }
 0x150   : > { %v1246_v16 = vmax.f32 %v1214_v9, 0.0  ;;  %v1248_v17 = vmax.f32 %v1216_v57, 0.0  ;;  %1672 = vmatmul.mubr.msk.bf16.vlgmr.msra.gmra.mrb[16].mxu0 %vm1288_vm2, %v1265_v8  ;;  %1673 = vmatmul.mubr.msk.bf16.vlgmr.msra.gmra.mrb[16].mxu1 %vm1288_vm2, %v1265_v8 }
 0x151   : > { %v1270_v18 = vpack.c.bf16 %v1245_v12, %v1237_v10  ;;  %v1272_v19 = vpack.c.bf16 %v1247_v13, %v1239_v11  ;;  %1406 = vmatprep.mubr.bf16.mxu0 %v1962_v0  ;;  %1447 = vmatprep.mubr.bf16.mxu1 %v1962_v0 }
 0x152   : > { %v1271_v20 = vpack.c.bf16 %v1246_v16, %v1238_v14  ;;  %v1273_v58 = vpack.c.bf16 %v1248_v17, %v1240_v15  ;;  %v1083_v21 = vpop.f32.mrb[12].mxu0  ;;  %v1136_v22 = vpop.f32.mrb[12].mxu1 }
 0x153   : > { %v1221_v24 = vadd.f32 %v2217_v59, %v1083_v21  ;;  %v1223_v25 = vadd.f32 %v2217_v59, %v1136_v22  ;;  %v1085_v26 = vpop.f32.mrb[13].mxu0  ;;  %v1138_v27 = vpop.f32.mrb[13].mxu1 }
 0x154   : > { %v1222_v28 = vadd.f32 %v2217_v59, %v1085_v26  ;;  %v1224_v29 = vadd.f32 %v2217_v59, %v1138_v27  ;;  %v1087_v30 = vpop.f32.mrb[14].mxu0  ;;  %v1140_v31 = vpop.f32.mrb[14].mxu1  ;;  %1374 = vmatprep.subr.bf16.mxu0 %v1271_v20  ;;  %1415 = vmatprep.subr.bf16.mxu1 %v1273_v58 }
 0x155   : > { %v1229_v0 = vadd.f32 %v2227_v23, %v1087_v30  ;;  %v1231_v32 = vadd.f32 %v2227_v23, %v1140_v31  ;;  %v1089_v33 = vpop.f32.mrb[15].mxu0  ;;  %v1142_v34 = vpop.f32.mrb[15].mxu1  ;;  %1375 = vmatpush1.bf16.msra.mxu0 %v1270_v18  ;;  %1416 = vmatpush1.bf16.msra.mxu1 %v1272_v19  ;;  %v1253_v37 = vmax.f32 %v1221_v24, 0.0  ;;  %v1255_v38 = vmax.f32 %v1223_v25, 0.0 }
 0x156   : > { %v1230_v35 = vadd.f32 %v2227_v23, %v1089_v33  ;;  %v1232_v36 = vadd.f32 %v2227_v23, %v1142_v34  ;;  %v1254_v40 = vmax.f32 %v1222_v28, 0.0  ;;  %v1256_v41 = vmax.f32 %v1224_v29, 0.0  ;;  %v1286_v23 = vpop.permute.xlu0 %1285 }
 0x157   : > { %v1261_v39 = vmax.f32 %v1229_v0, 0.0  ;;  %v1263_v59 = vmax.f32 %v1231_v32, 0.0 }
 0x158   : > { %v1262_v42 = vmax.f32 %v1230_v35, 0.0  ;;  %v1264_v43 = vmax.f32 %v1232_v36, 0.0 }
 0x159   : > { %v1278_v44 = vpack.c.bf16 %v1261_v39, %v1253_v37  ;;  %v1280_v45 = vpack.c.bf16 %v1263_v59, %v1255_v38 }
 0x15a   : > { %v1279_v46 = vpack.c.bf16 %v1262_v42, %v1254_v40  ;;  %v1281_v47 = vpack.c.bf16 %v1264_v43, %v1256_v41 }
 0x15c   : > { %1376 = vmatprep.subr.bf16.mxu0 %v1279_v46  ;;  %1417 = vmatprep.subr.bf16.mxu1 %v1281_v47 }
 0x15d   : > { %1377 = vmatpush1.bf16.msra.mxu0 %v1278_v44  ;;  %1418 = vmatpush1.bf16.msra.mxu1 %v1280_v45 }
 0x160   : > { %1674 = vmatmul.mubr.msk.bf16.vlgmr.msra.gmra.mrb[20].mxu0 %vm1288_vm2, %v1265_v8  ;;  %1675 = vmatmul.mubr.msk.bf16.vlgmr.msra.gmra.mrb[20].mxu1 %vm1288_vm2, %v1265_v8 }
 0x223   : > { %v1326_v48 = vpop.f32.mrb[16].mxu0  ;;  %v1367_v49 = vpop.f32.mrb[16].mxu1 }
 0x224   : > { %v1327_v50 = vadd.f32 %v1326_v48, %v1286_v23  ;;  %v1368_v51 = vadd.f32 %v1367_v49, %v1286_v23  ;;  %v1328_v52 = vpop.f32.mrb[17].mxu0  ;;  %v1369_v53 = vpop.f32.mrb[17].mxu1 }
 0x225   : > { %v1329_v54 = vadd.f32 %v1328_v52, %v1286_v23  ;;  %v1370_v55 = vadd.f32 %v1369_v53, %v1286_v23  ;;  %v1330_v56 = vpop.f32.mrb[18].mxu0  ;;  %v1371_v60 = vpop.f32.mrb[18].mxu1 }
 0x226   : > { %v1331_v61 = vpop.f32.mrb[19].mxu0  ;;  %v1372_v62 = vpop.f32.mrb[19].mxu1 }
 0x227   : > { %v1686_v63 = vpack.c.bf16 %v1329_v54, %v1327_v50  ;;  %v1687_v1 = vpack.c.bf16 %v1370_v55, %v1368_v51 }
 0x229   : > { %1488 = vst [vmem:[%s241_s17] sm:$0xff] %v1686_v63  ;;  %1489 = vst [vmem:[%s241_s17 + $0x8] sm:$0xff] %v1687_v1 }
 0x233   : > { %v1408_v2 = vpop.f32.mrb[20].mxu0  ;;  %v1449_v3 = vpop.f32.mrb[20].mxu1 }
 0x234   : > { %v1409_v4 = vadd.f32 %v1408_v2, %v1286_v23  ;;  %v1450_v5 = vadd.f32 %v1449_v3, %v1286_v23  ;;  %v1410_v6 = vpop.f32.mrb[21].mxu0  ;;  %v1451_v7 = vpop.f32.mrb[21].mxu1 }
 0x235   : > { %v1411_v8 = vadd.f32 %v1410_v6, %v1286_v23  ;;  %v1452_v9 = vadd.f32 %v1451_v7, %v1286_v23  ;;  %v1412_v57 = vpop.f32.mrb[22].mxu0  ;;  %v1453_v10 = vpop.f32.mrb[22].mxu1 }
 0x236   : > { %v1413_v11 = vpop.f32.mrb[23].mxu0  ;;  %v1454_v12 = vpop.f32.mrb[23].mxu1 }
 0x237   : > { %v1688_v13 = vpack.c.bf16 %v1411_v8, %v1409_v4  ;;  %v1689_v14 = vpack.c.bf16 %v1452_v9, %v1450_v5 }
 0x239   : > { %1490 = vst [vmem:[%s241_s17 + $0x10] sm:$0xff] %v1688_v13  ;;  %1491 = vst [vmem:[%s241_s17 + $0x18] sm:$0xff] %v1689_v14 }
 0x23a   : > { %1879 = shalt.err (!%p1876_p7)
}
 0x23b   : > { %s1880_s29 = scalar_lea.hbm %s2270_s10, 512  ;;  %s1884_s26 = scalar_lea.hbm %s2330_s5, 2048 }
 0x23c   : > { %p1881_p9 = scmp.ne.s32.totalorder %s2270_s10, %s1880_s29  ;;  %p1885_p12 = scmp.lt.u32.totalorder %s2270_s10, %s2330_s5 }
 0x23d   : > { %p1886_p13 = scmp.lt.u32.totalorder %s1884_s26, %s1880_s29  ;;  %p1888_p1 = scmp.lt.u32.totalorder %s1880_s29, %s2270_s10 }
 0x23e   : > { %p1882_p10 = pnand %p1881_p9, %p2045_p3 }
 0x23f   : > { %p1887_p0 = por %p1886_p13, %p1885_p12 }
 0x240   : > { %p1883_p11 = pneg %p1882_p10 }
 0x241   : > { %p1889_p2 = por %p1888_p1, %p1887_p0 }
 0x243   : > { %p1890_p4 = pnand %p1889_p2, %p1883_p11 }
 0x245   : > { %1893 = shalt.err (!%p1890_p4)
}
 0x246   : > { %1756 = dma.vmem_to_hbm [thread:$0]  (%p2045_p3), %s2272_s9, 512, %s2270_s10, %s1493_s12  }
 0x247 PF: > { %p1762_p5 = scmp.ge.s32.totalorder %s1960_s25, 2  ;;  %s1521_s8 = sand.u32 1, %s1932_s18  }
 0x248   : > { %s1522_s21 = scalar_lea.sflag [#allocation3], %s1521_s8 }
 0x249   : > { %p1759_p6 = pnand %p1762_p5, %p2054_p8 }
 0x24b   : > { %1927 = dma.done.wait (!%p1759_p6), %s1522_s21, 512  }
 0x24c   : > { %1929 = vsyncadd (!%p1759_p6), %s1522_s21, 4294966784  ;;  %s18_s25 = sadd.s32 1, %s1960_s25   ;;  %s2337_s6 = sld [smem:[#allocation5_spill]] }
 0x24d   : > { %p15_p7 = scmp.ge.s32.totalorder %s18_s25, 6   ;;  %s2338_s9 = sld [smem:[#allocation6_spill]] }
 0x24e   : > { %s2339_s18 = smov %s1936_s19  ;;  %s2340_s19 = smov %s1940_s20 }
 0x24f   : > { %s2341_s20 = smov %s2063_s11  ;;  %s2342_s21 = smov %s1952_s23 }
 0x250   : > { %s2343_s22 = smov %s1956_s24  ;;  %17 = sbr.rel (!%p15_p7) target bundleno = 5 (0x5), region = 77 }
 0x252   : > { %s2344_s23 = smov %s2337_s6 }
 0x253   : > { %s2345_s24 = smov %s2338_s9 }
 0x257   :  { %1527 = vsyncpa [#allocation3], 1 }
 0x258   :  { %1529 = vsyncpa [#allocation3 + $0x1], 1 }

</bundles_post_ra>
